<compile_context>
chip_gen: v6e
topology: v6e:2x2x1
jax: 0.10.0
libtpu: 0.0.40
codegen_flags: <defaults>
</compile_context>

<pallas_src>
import jax
import jax.numpy as jnp
from jax.experimental import pallas as pl
from jax.experimental.pallas import tpu as pltpu

# Problem sizes (small, consistent with the module).
N, C_IN, H, W = 2, 4, 16, 16
C_OUT = 8
KH = KW = 3
PAD = 1
EPS = 1e-5
NEG_SLOPE = 0.2

NHW = N * H * W          # 512 -> lane dimension (4 x 128 lanes)
KKC = KH * KW * C_IN     # 36  -> matmul contraction dimension


# ---------------------------------------------------------------------------
# Fused kernel: conv (single K=36 MXU matmul) -> training-mode BN -> LeakyReLU.
# Output layout is (C_OUT, N*H*W): channels on sublanes, batch*spatial on lanes.
# ---------------------------------------------------------------------------
def _fused_conv_bn_lrelu_kernel(w_ref, p_ref, gamma_ref, beta_ref, o_ref):
    # w_ref:     (C_OUT, KKC)   reshaped conv weights
    # p_ref:     (KKC, NHW)     im2col patches
    # gamma_ref: (C_OUT, 1)     BN weight
    # beta_ref:  (C_OUT, 1)     BN bias
    # o_ref:     (C_OUT, NHW)   lane-dense output (4 full f32 vregs)

    # Conv as one matmul on the MXU, accumulated in f32.
    acc = jnp.dot(w_ref[...], p_ref[...],
                  preferred_element_type=jnp.float32)        # (C_OUT, NHW)

    # Training-mode BatchNorm statistics over (N, H, W) == the lane axis.
    # Two-pass (centered) variance avoids E[x^2]-E[x]^2 cancellation.
    inv_count = jnp.float32(1.0 / NHW)
    mean = jnp.sum(acc, axis=1, keepdims=True) * inv_count   # (C_OUT, 1)
    centered = acc - mean
    var = jnp.sum(centered * centered, axis=1, keepdims=True) * inv_count

    scale = gamma_ref[...] * jax.lax.rsqrt(var + EPS)        # (C_OUT, 1)
    z = centered * scale + beta_ref[...]                     # broadcast along lanes

    # LeakyReLU(0.2)
    o_ref[...] = jnp.where(z >= 0, z, NEG_SLOPE * z).astype(o_ref.dtype)


# ---------------------------------------------------------------------------
# Wrapper (NCHW in / NCHW out, like the PyTorch module)
# ---------------------------------------------------------------------------
def conv_bn_block(x_nchw, w_oihw, conv_bias, gamma, beta):
    # Conv bias is cancelled by the training-mode BN mean subtraction -> drop it.
    del conv_bias

    # Glue: layout conversion + padding + im2col (XLA fuses this into the feed).
    x = jnp.transpose(x_nchw, (0, 2, 3, 1))                             # NHWC
    xp = jnp.pad(x, ((0, 0), (PAD, PAD), (PAD, PAD), (0, 0)))           # (N,Hp,Wp,Cin)
    cols = [xp[:, kh:kh + H, kw:kw + W, :]
            for kh in range(KH) for kw in range(KW)]                    # 9 x (N,H,W,Cin)
    patches = jnp.stack(cols, axis=3)                                   # (N,H,W,KH*KW,Cin)
    patches = patches.reshape(NHW, KKC).T                               # (KKC, NHW)

    # (C_OUT, C_IN, KH, KW) -> (KH, KW, C_IN, C_OUT) -> (KKC, C_OUT) -> (C_OUT, KKC)
    w2 = jnp.transpose(w_oihw, (2, 3, 1, 0)).reshape(KKC, C_OUT).T

    out_flat = pl.pallas_call(
        _fused_conv_bn_lrelu_kernel,
        out_shape=jax.ShapeDtypeStruct((C_OUT, NHW), jnp.float32),
        in_specs=[
            pl.BlockSpec(memory_space=pltpu.MemorySpace.VMEM),   # w2
            pl.BlockSpec(memory_space=pltpu.MemorySpace.VMEM),   # patches
            pl.BlockSpec(memory_space=pltpu.MemorySpace.VMEM),   # gamma
            pl.BlockSpec(memory_space=pltpu.MemorySpace.VMEM),   # beta
        ],
        out_specs=pl.BlockSpec(memory_space=pltpu.MemorySpace.VMEM),
    )(w2, patches, gamma.reshape(C_OUT, 1), beta.reshape(C_OUT, 1))

    # (C_OUT, N*H*W) -> (N, C_OUT, H, W)
    return jnp.transpose(out_flat.reshape(C_OUT, N, H, W), (1, 0, 2, 3))


# ---------------------------------------------------------------------------
# Pure-JAX reference (sanity check of the kernel path; includes the conv bias)
# ---------------------------------------------------------------------------
def conv_bn_block_ref(x_nchw, w_oihw, conv_bias, gamma, beta):
    y = jax.lax.conv_general_dilated(
        x_nchw, w_oihw, window_strides=(1, 1),
        padding=((PAD, PAD), (PAD, PAD)),
        dimension_numbers=("NCHW", "OIHW", "NCHW"))
    y = y + conv_bias.reshape(1, C_OUT, 1, 1)
    mean = y.mean(axis=(0, 2, 3), keepdims=True)
    var = y.var(axis=(0, 2, 3), keepdims=True)  # biased variance (training-mode BN)
    z = (y - mean) / jnp.sqrt(var + EPS)
    z = z * gamma.reshape(1, C_OUT, 1, 1) + beta.reshape(1, C_OUT, 1, 1)
    return jnp.where(z >= 0, z, NEG_SLOPE * z)


if __name__ == "__main__":
    key = jax.random.PRNGKey(0)
    k_x, k_w, k_b = jax.random.split(key, 3)

    # Deterministic synthetic parameters (shapes from the module's __init__).
    x = jax.random.normal(k_x, (N, C_IN, H, W), dtype=jnp.float32)
    fan_in = C_IN * KH * KW
    w = jax.random.normal(k_w, (C_OUT, C_IN, KH, KW), dtype=jnp.float32) / jnp.sqrt(fan_in)
    b = jax.random.uniform(k_b, (C_OUT,), minval=-0.1, maxval=0.1, dtype=jnp.float32)
    gamma = jnp.ones((C_OUT,), jnp.float32)   # BatchNorm2d default init
    beta = jnp.zeros((C_OUT,), jnp.float32)

    out = jax.jit(conv_bn_block)(x, w, b, gamma, beta)
    out = jax.block_until_ready(out)

    ref = conv_bn_block_ref(x, w, b, gamma, beta)
    assert out.shape == (N, C_OUT, H, W)
    assert jnp.max(jnp.abs(out - ref)) < 1e-3, "mismatch vs reference"

    print("KERNEL_OK")
</pallas_src>

<mosaic_0001>
module attributes {stable_mosaic.version = 11 : i64} {
  func.func @_fused_conv_bn_lrelu_kernel(%arg0: memref<8x36xf32, #tpu.memory_space<vmem>>, %arg1: memref<36x512xf32, #tpu.memory_space<vmem>>, %arg2: memref<8x1xf32, #tpu.memory_space<vmem>>, %arg3: memref<8x1xf32, #tpu.memory_space<vmem>>, %arg4: memref<8x512xf32, #tpu.memory_space<vmem>>) attributes {dimension_semantics = [], scalar_prefetch = 0 : i64, scratch_operands = 0 : i64, tpu.core_type = #tpu.core_type<tc>} {
    %c0 = arith.constant 0 : index
    %c0_0 = arith.constant 0 : index
    %0 = vector.load %arg0[%c0, %c0_0] : memref<8x36xf32, #tpu.memory_space<vmem>>, vector<8x36xf32>
    %c0_1 = arith.constant 0 : index
    %c0_2 = arith.constant 0 : index
    %1 = vector.load %arg1[%c0_1, %c0_2] : memref<36x512xf32, #tpu.memory_space<vmem>>, vector<36x512xf32>
    %cst = arith.constant dense<0.000000e+00> : vector<8x512xf32>
    %2 = tpu.matmul %0, %1, %cst {dimension_numbers = #tpu.dot_dimension_numbers<[1], [0], [0], [1], [0, 0, 1, 1], [], []>} : vector<8x36xf32>, vector<36x512xf32>, vector<8x512xf32> -> vector<8x512xf32>
    %cst_3 = arith.constant dense<0.000000e+00> : vector<8xf32>
    %3 = vector.multi_reduction <add>, %2, %cst_3 [1] : vector<8x512xf32> to vector<8xf32>
    %4 = vector.shape_cast %3 : vector<8xf32> to vector<8x1xf32>
    %cst_4 = arith.constant 0.001953125 : f32
    %5 = vector.broadcast %cst_4 : f32 to vector<8x1xf32>
    %6 = arith.mulf %4, %5 : vector<8x1xf32>
    %7 = vector.broadcast %6 : vector<8x1xf32> to vector<8x512xf32>
    %8 = arith.subf %2, %7 : vector<8x512xf32>
    %9 = arith.mulf %8, %8 : vector<8x512xf32>
    %cst_5 = arith.constant dense<0.000000e+00> : vector<8xf32>
    %10 = vector.multi_reduction <add>, %9, %cst_5 [1] : vector<8x512xf32> to vector<8xf32>
    %11 = vector.shape_cast %10 : vector<8xf32> to vector<8x1xf32>
    %cst_6 = arith.constant 0.001953125 : f32
    %12 = vector.broadcast %cst_6 : f32 to vector<8x1xf32>
    %13 = arith.mulf %11, %12 : vector<8x1xf32>
    %c0_7 = arith.constant 0 : index
    %c0_8 = arith.constant 0 : index
    %14 = vector.load %arg2[%c0_7, %c0_8] : memref<8x1xf32, #tpu.memory_space<vmem>>, vector<8x1xf32>
    %cst_9 = arith.constant 9.99999974E-6 : f32
    %15 = vector.broadcast %cst_9 : f32 to vector<8x1xf32>
    %16 = arith.addf %13, %15 : vector<8x1xf32>
    %17 = math.rsqrt %16 : vector<8x1xf32>
    %18 = arith.mulf %14, %17 : vector<8x1xf32>
    %19 = vector.broadcast %18 : vector<8x1xf32> to vector<8x512xf32>
    %20 = arith.mulf %8, %19 : vector<8x512xf32>
    %c0_10 = arith.constant 0 : index
    %c0_11 = arith.constant 0 : index
    %21 = vector.load %arg3[%c0_10, %c0_11] : memref<8x1xf32, #tpu.memory_space<vmem>>, vector<8x1xf32>
    %22 = vector.broadcast %21 : vector<8x1xf32> to vector<8x512xf32>
    %23 = arith.addf %20, %22 : vector<8x512xf32>
    %cst_12 = arith.constant 0.000000e+00 : f32
    %24 = vector.broadcast %cst_12 : f32 to vector<8x512xf32>
    %25 = arith.cmpf oge, %23, %24 : vector<8x512xf32>
    %cst_13 = arith.constant 2.000000e-01 : f32
    %26 = vector.broadcast %cst_13 : f32 to vector<8x512xf32>
    %27 = arith.mulf %26, %23 : vector<8x512xf32>
    %28 = arith.select %25, %23, %27 : vector<8x512xi1>, vector<8x512xf32>
    %c0_14 = arith.constant 0 : index
    %c0_15 = arith.constant 0 : index
    %29 = vector.load %arg4[%c0_14, %c0_15] : memref<8x512xf32, #tpu.memory_space<vmem>>, vector<8x512xf32>
    tpu.vector_store %arg4[%c0_14, %c0_15], %28 {strides = array<i32>} : memref<8x512xf32, #tpu.memory_space<vmem>>, vector<8x512xf32>,
    return
  }
}

</mosaic_0001>

<bundles_post_ra>
// kernel: conv_bn_block.1
= control target key start
LH: loop header
LB: loop body
LE: loop exit
PB: predicated region body
PF: predicated region fallthrough
CT: control target
= control target key end

     0   :  { %vm42_vm0 = vcmask 1043456   ;;  %v272_v3 = vmov 0.0   ;;  %vm38_vm1 = vcmask 293888   ;;  %v273_v42 = vmov 0   ;;  %s384_s1 = inlined_call_operand.vmem [shape: f32[36,512], index: 1, kind: input, shape index: {}]   ;;  %s385_s0 = inlined_call_operand.vmem [shape: f32[8,36], index: 0, kind: input, shape index: {}]   ;;  %s386_s2 = inlined_call_operand.vmem [shape: f32[8,1], index: 2, kind: input, shape index: {}]   ;;  %s387_s3 = inlined_call_operand.vmem [shape: f32[8,1], index: 3, kind: input, shape index: {}]   ;;  %s388_s4 = inlined_call_operand.vmem [shape: f32[8,512], index: 4, kind: output, shape index: {}]  }
   0x1   :  { %v35_v0 = vld [vmem:[%s384_s1 + $0x88] sm:$0xf]  ;;  %v34_v1 = vld [vmem:[%s384_s1 + $0x80] sm:$0xf]  ;;  %119 = vmatprep.mubr.f32.mxu0 %v272_v3  ;;  %190 = vmatprep.mubr.f32.mxu1 %v272_v3  ;;  %v37_v4 = vld [vmem:[%s384_s1 + $0x98] sm:$0xf] }
   0x2   :  { %v31_v2 = vld [vmem:[%s384_s1 + $0x68] sm:$0xff]  ;;  %260 = vmatprep.subr.msk.mxu0 %vm42_vm0, %v35_v0  ;;  %v30_v5 = vld [vmem:[%s384_s1 + $0x60] sm:$0xff]  ;;  %v36_v6 = vld [vmem:[%s384_s1 + $0x90] sm:$0xf]  ;;  %263 = vmatprep.subr.msk.mxu1 %vm42_vm0, %v37_v4 }
   0x3   :  { %261 = vmatpush1.msk.msra.mxu0 %vm42_vm0, %v34_v1  ;;  %v27_v7 = vld [vmem:[%s384_s1 + $0x48] sm:$0xff]  ;;  %v33_v8 = vld [vmem:[%s384_s1 + $0x78] sm:$0xff]  ;;  %264 = vmatpush1.msk.msra.mxu1 %vm42_vm0, %v36_v6  ;;  %v26_v9 = vld [vmem:[%s384_s1 + $0x40] sm:$0xff] }
   0x4   :  { %79 = vmatprep.subr.mxu0 %v31_v2  ;;  %v32_v10 = vld [vmem:[%s384_s1 + $0x70] sm:$0xff]  ;;  %v29_v11 = vld [vmem:[%s384_s1 + $0x58] sm:$0xff]  ;;  %150 = vmatprep.subr.mxu1 %v33_v8  ;;  %v23_v12 = vld [vmem:[%s384_s1 + $0x28] sm:$0xff] }
   0x5   :  { %80 = vmatpush1.msra.mxu0 %v30_v5  ;;  %v28_v13 = vld [vmem:[%s384_s1 + $0x50] sm:$0xff]  ;;  %151 = vmatpush1.msra.mxu1 %v32_v10  ;;  %v22_v14 = vld [vmem:[%s384_s1 + $0x20] sm:$0xff]  ;;  %v25_v15 = vld [vmem:[%s384_s1 + $0x38] sm:$0xff] }
   0x6   :  { %81 = vmatprep.subr.mxu0 %v27_v7  ;;  %152 = vmatprep.subr.mxu1 %v29_v11  ;;  %v19_v16 = vld [vmem:[%s384_s1 + $0x8] sm:$0xff]  ;;  %v24_v17 = vld [vmem:[%s384_s1 + $0x30] sm:$0xff]  ;;  %v18_v18 = vld [vmem:[%s384_s1] sm:$0xff] }
   0x7   :  { %82 = vmatpush1.msra.mxu0 %v26_v9  ;;  %153 = vmatpush1.msra.mxu1 %v28_v13  ;;  %v21_v19 = vld [vmem:[%s384_s1 + $0x18] sm:$0xff]  ;;  %v17_v20 = vld [vmem:[%s385_s0] sm:$0xff]  ;;  %v20_v21 = vld [vmem:[%s384_s1 + $0x10] sm:$0xff] }
   0x8   :  { %83 = vmatprep.subr.mxu0 %v23_v12  ;;  %154 = vmatprep.subr.mxu1 %v25_v15  ;;  %v217_v46 = vld [vmem:[%s386_s2] sm:$0xff] }
   0x9   :  { %84 = vmatpush1.msra.mxu0 %v22_v14  ;;  %155 = vmatpush1.msra.mxu1 %v24_v17  ;;  %v230_v49 = vld [vmem:[%s387_s3] sm:$0xff] }
   0xa   :  { %85 = vmatprep.subr.mxu0 %v19_v16  ;;  %156 = vmatprep.subr.mxu1 %v21_v19 }
   0xb   :  { %86 = vmatpush1.msra.mxu0 %v18_v18  ;;  %157 = vmatpush1.msra.mxu1 %v20_v21 }
   0xc   :  { %262 = vmatmul.mubr.msk.f32.vlgmr.msra.gmra.mxu0 %vm38_vm1, %v17_v20  ;;  %265 = vmatmul.mubr.msk.f32.vlgmr.msra.gmra.mxu1 %vm38_vm1, %v17_v20 }
   0xd   :  { %268 = vset.pattern.permute.xlu1 %v273_v42  ;;  %269 = vset.pattern.permute.xlu0 %v273_v42 }
  0xcc   :  { %v121_v22 = vpop.f32.mrf.mxu0  ;;  %v192_v24 = vpop.f32.mrf.mxu1 }
  0xce   :  { %v123_v23 = vpop.f32.mrf.mxu0  ;;  %v194_v27 = vpop.f32.mrf.mxu1 }
  0xcf   :  { %v197_v25 = vadd.f32 %v123_v23, %v121_v22 }
  0xd1   :  { %v198_v26 = vadd.f32 %v197_v25, %v192_v24 }
  0xd3   :  { %v199_v28 = vadd.f32 %v198_v26, %v194_v27 }
  0xd5   :  { %200 = vadd.xlane.f32.xlu0 %v199_v28 }
 0x15e   :  { %v201_v29 = vpop.xlane.xlu0 %200 }
 0x15f   :  { %v202_v30 = vmul.f32 0.001953125, %v201_v29 }
 0x161   :  { %v203_v31 = vsub.f32 %v121_v22, %v202_v30  ;;  %v204_v32 = vsub.f32 %v123_v23, %v202_v30  ;;  %v205_v33 = vsub.f32 %v192_v24, %v202_v30  ;;  %v206_v34 = vsub.f32 %v194_v27, %v202_v30 }
 0x163   :  { %v207_v35 = vmul.f32 %v203_v31, %v203_v31  ;;  %v208_v36 = vmul.f32 %v204_v32, %v204_v32  ;;  %v209_v37 = vmul.f32 %v205_v33, %v205_v33  ;;  %v210_v39 = vmul.f32 %v206_v34, %v206_v34 }
 0x165   :  { %v211_v38 = vadd.f32 %v208_v36, %v207_v35 }
 0x167   :  { %v212_v40 = vadd.f32 %v211_v38, %v209_v37 }
 0x169   :  { %v213_v41 = vadd.f32 %v212_v40, %v210_v39 }
 0x16b   :  { %214 = vadd.xlane.f32.xlu0 %v213_v41 }
 0x1f4   :  { %v215_v43 = vpop.xlane.xlu0 %214 }
 0x1f5   :  { %v216_v44 = vmul.f32 0.001953125, %v215_v43 }
 0x1f7   :  { %v218_v45 = vadd.f32 1e-05, %v216_v44 }
 0x1f9   :  { %270 = vrsqrt.f32 %v218_v45 }
 0x206   :  { %v271_v47 = vpop.eup %270 }
 0x207   :  { %v220_v48 = vmul.f32 %v271_v47, %v217_v46 }
 0x209   :  { %223 = vperm.xlu1 %268, %v220_v48  }
 0x20d   :  { %233 = vperm.xlu1 %268, %v230_v49  }
 0x284   :  { %v224_v50 = vpop.permute.xlu1 %223 }
 0x285   :  { %v226_v51 = vmul.f32 %v224_v50, %v203_v31  ;;  %v227_v52 = vmul.f32 %v224_v50, %v204_v32  ;;  %v228_v53 = vmul.f32 %v224_v50, %v205_v33  ;;  %v229_v54 = vmul.f32 %v224_v50, %v206_v34 }
 0x288   :  { %v234_v55 = vpop.permute.xlu1 %233 }
 0x289   :  { %v236_v56 = vadd.f32 %v234_v55, %v226_v51  ;;  %v237_v57 = vadd.f32 %v234_v55, %v227_v52  ;;  %v238_v58 = vadd.f32 %v234_v55, %v228_v53  ;;  %v239_v59 = vadd.f32 %v234_v55, %v229_v54 }
 0x28b   :  { %vm240_vm2 = vcmp.ge.f32.partialorder %v236_v56, 0.0  ;;  %vm241_vm3 = vcmp.ge.f32.partialorder %v237_v57, 0.0  ;;  %vm242_vm4 = vcmp.ge.f32.partialorder %v238_v58, 0.0  ;;  %vm243_vm5 = vcmp.ge.f32.partialorder %v239_v59, 0.0 }
 0x28c   :  { %v244_v60 = vmul.f32 0.2, %v236_v56  ;;  %v245_v61 = vmul.f32 0.2, %v237_v57  ;;  %v246_v62 = vmul.f32 0.2, %v238_v58 }
 0x28d   :  { %v247_v63 = vmul.f32 0.2, %v239_v59 }
 0x28e   :  { %v248_v0 = vsel %vm240_vm2, %v236_v56, %v244_v60  ;;  %v249_v1 = vsel %vm241_vm3, %v237_v57, %v245_v61  ;;  %v250_v2 = vsel %vm242_vm4, %v238_v58, %v246_v62 }
 0x28f   :  { %v251_v3 = vsel %vm243_vm5, %v239_v59, %v247_v63  ;;  %252 = vst [vmem:[%s388_s4] sm:$0xff] %v248_v0  ;;  %253 = vst [vmem:[%s388_s4 + $0x8] sm:$0xff] %v249_v1 }
 0x290   :  { %254 = vst [vmem:[%s388_s4 + $0x10] sm:$0xff] %v250_v2  ;;  %255 = vst [vmem:[%s388_s4 + $0x18] sm:$0xff] %v251_v3 }

</bundles_post_ra>
